<compile_context>
chip_gen: v5e
topology: v5e:2x2
jax: 0.10.0
libtpu: 0.0.40
codegen_flags: <defaults>
</compile_context>

<pallas_src>
import functools
import math

import jax
import jax.numpy as jnp
from jax.experimental import pallas as pl
from jax.experimental.pallas import tpu as pltpu


def _coattention_kernel(c_ref, q_ref, cb_ref, qb_ref,
                        w4c_ref, w4q_ref, w4mlu_ref, bias_ref,
                        out_ref, *, mxu_dtype, approx_recip, reassociate,
                        emit_c_segment):
    c = c_ref[...]                                   # (Bt, Lc, D)
    q = q_ref[...]                                   # (Bt, Lq, D)
    qb = qb_ref[...]                                 # (Bt, 1, Lq) additive bias (0 / -1e10)
    cb = jnp.transpose(cb_ref[...], (0, 2, 1))       # (Bt, Lc, 1)  (tiny lane->sublane relayout)
    w4c = w4c_ref[...]                               # (1, D)
    w4q = w4q_ref[...]                               # (1, D)
    w4mlu = w4mlu_ref[...]                           # (1, D)
    bias = bias_ref[0]                               # scalar (SMEM)

    D = c.shape[-1]
    f32 = jnp.float32

    def mx(x):
        return x if mxu_dtype == f32 else x.astype(mxu_dtype)

    # ---- trilinear attention scores: S = C@w4C + (Q@w4Q)^T + (C*w4mlu)@Q^T + b
    # rank-1 terms as VPU multiply + lane reduction (avoid 1-lane MXU matmuls).
    s0 = jnp.sum(c * w4c, axis=-1, keepdims=True) + bias           # (Bt, Lc, 1)
    s1t = jnp.sum(q * w4q, axis=-1)[:, None, :]                    # (Bt, 1, Lq)
    s2 = jnp.einsum('bcd,bqd->bcq', mx(c * w4mlu), mx(q),
                    preferred_element_type=f32)                    # (Bt, Lc, Lq)
    S = s2 + s0 + s1t                                              # (Bt, Lc, Lq)

    # ---- row softmax (over queries, axis 2), additive mask bias; S1 kept implicit
    L1 = S + qb
    m1 = jnp.max(L1, axis=2, keepdims=True)
    e1 = jnp.exp(L1 - m1)
    inv_row = pl.reciprocal(jnp.sum(e1, axis=2, keepdims=True),
                            approx=approx_recip)                   # (Bt, Lc, 1)

    # ---- column softmax (over contexts, axis 1), additive mask bias; S2 kept implicit
    L2 = S + cb
    m2 = jnp.max(L2, axis=1, keepdims=True)
    e2 = jnp.exp(L2 - m2)
    inv_col = pl.reciprocal(jnp.sum(e2, axis=1, keepdims=True),
                            approx=approx_recip)                   # (Bt, 1, Lq)

    e1m = mx(e1)

    # A = S1 @ Q, normalization folded in AFTER the matmul.
    A = jnp.einsum('bcq,bqd->bcd', e1m, mx(q),
                   preferred_element_type=f32) * inv_row           # (Bt, Lc, D)

    # Bm = (S1 @ S2^T) @ C with S1 = e1*inv_row, S2 = e2*inv_col.
    if reassociate:
        # Reassociated: tmp = S2^T @ C, then Bm = S1 @ tmp.  No (Lc,Lc) intermediate.
        tmp = jnp.einsum('bcq,bcd->bqd', mx(e2), mx(c),
                         preferred_element_type=f32)               # (Bt, Lq, D)
        tmp = tmp * jnp.transpose(inv_col, (0, 2, 1))              # fold column norm
        Bm = jnp.einsum('bcq,bqd->bcd', e1m, mx(tmp),
                        preferred_element_type=f32) * inv_row      # (Bt, Lc, D)
    else:
        # D >> Lc: the (Lc,Lc) form is cheaper.
        s1s2t = jnp.einsum('bcq,bkq->bck', mx(e1 * inv_col), mx(e2),
                           preferred_element_type=f32)             # (Bt, Lc, Lc)
        Bm = jnp.einsum('bck,bkd->bcd', mx(s1s2t), mx(c),
                        preferred_element_type=f32) * inv_row      # (Bt, Lc, D)

    # ---- fused output [C, A, C*A, C*B] (C segment optional)
    segs = ([c] if emit_c_segment else []) + [A, c * A, c * Bm]
    if D % 128 == 0:
        # lane-aligned segment stores (no concat temporary, unmasked vst)
        for k, s in enumerate(segs):
            out_ref[:, :, k * D:(k + 1) * D] = s.astype(out_ref.dtype)
    else:
        out_ref[...] = jnp.concatenate(segs, axis=-1).astype(out_ref.dtype)


def _vmem_capacity_bytes():
    """Physical VMEM of the current chip; conservative 64 MiB (v7x) fallback."""
    try:
        cap = int(getattr(pltpu.get_tpu_info(), "vmem_capacity_bytes", 0))
        if cap > 0:
            return cap
    except Exception:
        pass
    return 64 << 20


def _per_batch_footprint_bytes(Lc, Lq, D, nseg, reassociate):
    """f32 VMEM bytes per batch element (pipeline buffers + live intermediates)."""
    # double-buffered pipeline I/O: C, Q, output slab, lane-dense mask biases
    io = 2 * (Lc * D + Lq * D + nseg * Lc * D + 2 * 8 * 128)
    # live intermediates: ~6 (Lc,Lq) slabs (S, L1/L2, e1, e2, compiler temps),
    # plus (Lc,D) A/Bm/C*w4mlu, (Lq,D) tmp and small vectors.
    live = 6 * Lc * Lq + 3 * Lc * D + Lq * D + 16 * (Lc + Lq)
    if not reassociate:
        live += Lc * Lc + Lc * Lq
    return 4 * (io + live)


def _choose_block_b(B, per_b_bytes, budget_bytes):
    bt = max(1, min(B, budget_bytes // max(per_b_bytes, 1)))
    # Keep the grid length >= 2 so the "parallel" batch axis can split across
    # v7x's two TensorCores (one extra ~0.35us grid step on single-TC parts).
    if B >= 2:
        bt = min(bt, B // 2)
    bt = max(1, bt)
    while B % bt != 0:
        bt -= 1
    return bt


def coattention(C, Q, Cmask, Qmask, w4C, w4Q, w4mlu, bias, *,
                block_b=None, precise=True, emit_c_segment=True):
    """Pallas COAttention forward (inference).  precise=False -> bf16 MXU operands."""
    B, Lc, D = C.shape
    Lq = Q.shape[1]
    nseg = 4 if emit_c_segment else 3

    # Shape-conditional Bm reassociation (new form wins when Lc*(Lq+D) > 2*Lq*D).
    reassociate = Lc * (Lq + D) > 2 * Lq * D

    # Additive mask biases, lane-dense (last dim = sequence length).
    qbias = ((Qmask.astype(jnp.float32) - 1.0) * 1e10).reshape(B, 1, Lq)
    cbias = ((Cmask.astype(jnp.float32) - 1.0) * 1e10).reshape(B, 1, Lc)
    w4c_row = w4C.astype(jnp.float32).reshape(1, D)
    w4q_row = w4Q.astype(jnp.float32).reshape(1, D)
    w4mlu_row = w4mlu.astype(jnp.float32).reshape(1, D)
    bias1 = bias.astype(jnp.float32).reshape(1)

    cap = _vmem_capacity_bytes()
    per_b = _per_batch_footprint_bytes(Lc, Lq, D, nseg, reassociate)
    if block_b is None:
        block_b = _choose_block_b(B, per_b, (cap * 3) // 8)
    assert B % block_b == 0, "block_b must divide B"

    est = block_b * per_b + 4 * (3 * D + 1)
    # 2x headroom on the estimate; never request the full physical VMEM
    # (Mosaic internal scratch needs room, especially on v7x's 64 MiB).
    vmem_limit = int(min(max(2 * est, 32 << 20), cap - (12 << 20)))

    kernel = functools.partial(
        _coattention_kernel,
        mxu_dtype=jnp.float32 if precise else jnp.bfloat16,
        approx_recip=not precise,
        reassociate=reassociate,
        emit_c_segment=emit_c_segment,
    )

    grid_spec = pltpu.PrefetchScalarGridSpec(
        num_scalar_prefetch=0,
        grid=(B // block_b,),
        in_specs=[
            pl.BlockSpec((block_b, Lc, D), lambda b: (b, 0, 0)),      # C
            pl.BlockSpec((block_b, Lq, D), lambda b: (b, 0, 0)),      # Q
            pl.BlockSpec((block_b, 1, Lc), lambda b: (b, 0, 0)),      # cbias (lane-dense)
            pl.BlockSpec((block_b, 1, Lq), lambda b: (b, 0, 0)),      # qbias (lane-dense)
            pl.BlockSpec((1, D), lambda b: (0, 0)),                   # w4C (row)
            pl.BlockSpec((1, D), lambda b: (0, 0)),                   # w4Q (row)
            pl.BlockSpec((1, D), lambda b: (0, 0)),                   # w4mlu (row)
            pl.BlockSpec(memory_space=pltpu.MemorySpace.SMEM),        # bias scalar
        ],
        out_specs=pl.BlockSpec((block_b, Lc, nseg * D), lambda b: (b, 0, 0)),
    )

    return pl.pallas_call(
        kernel,
        out_shape=jax.ShapeDtypeStruct((B, Lc, nseg * D), C.dtype),
        grid_spec=grid_spec,
        compiler_params=pltpu.CompilerParams(
            dimension_semantics=("parallel",),
            vmem_limit_bytes=vmem_limit),
    )(C, Q, cbias, qbias, w4c_row, w4q_row, w4mlu_row, bias1)


def coattention_ref(C, Q, Cmask, Qmask, w4C, w4Q, w4mlu, bias):
    """Plain-JAX reference mirroring the PyTorch forward (eval mode)."""
    B, Lc, D = C.shape
    Lq = Q.shape[1]
    cm = Cmask.astype(jnp.float32).reshape(B, Lc, 1)
    qm = Qmask.astype(jnp.float32).reshape(B, 1, Lq)
    s0 = jnp.matmul(C, w4C)                                   # (B,Lc,1)
    s1 = jnp.swapaxes(jnp.matmul(Q, w4Q), 1, 2)               # (B,1,Lq)
    s2 = jnp.matmul(C * w4mlu.reshape(1, 1, D),
                    jnp.swapaxes(Q, 1, 2))                     # (B,Lc,Lq)
    S = s0 + s1 + s2 + bias
    S1 = jax.nn.softmax(S * qm + (1.0 - qm) * -1e10, axis=2)
    S2 = jax.nn.softmax(S * cm + (1.0 - cm) * -1e10, axis=1)
    A = jnp.matmul(S1, Q)
    Bm = jnp.matmul(jnp.matmul(S1, jnp.swapaxes(S2, 1, 2)), C)
    return jnp.concatenate([C, A, C * A, C * Bm], axis=2)


def _xavier_uniform(key, shape):
    # PyTorch xavier_uniform_ fan computation
    if len(shape) == 2:
        fan_out, fan_in = shape[0], shape[1]
    else:  # (1, 1, D) case
        receptive = 1
        for s in shape[2:]:
            receptive *= s
        fan_in = shape[1] * receptive
        fan_out = shape[0] * receptive
    bound = math.sqrt(6.0 / (fan_in + fan_out))
    return jax.random.uniform(key, shape, jnp.float32, -bound, bound)


def _make_case(B, Lc, Lq, D, c_lens, q_lens, seed):
    key = jax.random.PRNGKey(seed)
    kC, kQ, k1, k2, k3 = jax.random.split(key, 5)
    C = jax.random.normal(kC, (B, Lc, D), jnp.float32)
    Q = jax.random.normal(kQ, (B, Lq, D), jnp.float32)
    # deterministic binary padding masks: first `len` positions valid
    Cmask = (jnp.arange(Lc)[None, :] < jnp.asarray(c_lens)[:, None]).astype(jnp.float32)
    Qmask = (jnp.arange(Lq)[None, :] < jnp.asarray(q_lens)[:, None]).astype(jnp.float32)
    w4C = _xavier_uniform(k1, (D, 1))
    w4Q = _xavier_uniform(k2, (D, 1))
    w4mlu = _xavier_uniform(k3, (1, 1, D))
    bias = jnp.zeros((1,), jnp.float32)
    return C, Q, Cmask, Qmask, w4C, w4Q, w4mlu, bias


if __name__ == "__main__":
    # Case 1: Lc > D -> reassociated Bm path; D % 128 != 0 -> concat store.
    args = _make_case(B=2, Lc=16, Lq=8, D=32, c_lens=[16, 12], q_lens=[8, 5], seed=0)
    ref = coattention_ref(*args)

    out = jax.block_until_ready(coattention(*args, precise=True))
    assert out.shape == ref.shape
    assert jnp.allclose(out, ref, atol=1e-4, rtol=1e-4), "f32 path mismatch vs reference"

    # Fast path: bf16 MXU operands + approx reciprocal (v6e/v7x throughput lever).
    out_fast = jax.block_until_ready(coattention(*args, precise=False))
    assert bool(jnp.all(jnp.isfinite(out_fast)))
    assert jnp.allclose(out_fast, ref, atol=1e-1, rtol=1e-1), "bf16 path mismatch vs reference"

    # Case 2: D >= Lc -> (Lc,Lc) Bm path; D % 128 == 0 -> lane-aligned segment stores.
    args2 = _make_case(B=2, Lc=8, Lq=8, D=128, c_lens=[8, 6], q_lens=[8, 4], seed=1)
    ref2 = coattention_ref(*args2)
    out2 = jax.block_until_ready(coattention(*args2, precise=True))
    assert jnp.allclose(out2, ref2, atol=1e-4, rtol=1e-4), "segment-store path mismatch"

    print("KERNEL_OK")
</pallas_src>

<mosaic_0001>
module attributes {stable_mosaic.version = 11 : i64} {
  func.func @_coattention_kernel(%arg0: i32, %arg1: memref<1x16x32xf32, #tpu.memory_space<vmem>>, %arg2: memref<1x8x32xf32, #tpu.memory_space<vmem>>, %arg3: memref<1x1x16xf32, #tpu.memory_space<vmem>>, %arg4: memref<1x1x8xf32, #tpu.memory_space<vmem>>, %arg5: memref<1x32xf32, #tpu.memory_space<vmem>>, %arg6: memref<1x32xf32, #tpu.memory_space<vmem>>, %arg7: memref<1x32xf32, #tpu.memory_space<vmem>>, %arg8: memref<1xf32, #tpu.memory_space<smem>>, %arg9: memref<1x16x128xf32, #tpu.memory_space<vmem>>) attributes {dimension_semantics = [#tpu.dimension_semantics<parallel>], iteration_bounds = array<i64: 2>, scalar_prefetch = 0 : i64, scratch_operands = 0 : i64, tpu.core_type = #tpu.core_type<tc>, window_params = [{transform_indices = @transform_0, window_bounds = array<i64: 1, 16, 32>}, {transform_indices = @transform_1, window_bounds = array<i64: 1, 8, 32>}, {transform_indices = @transform_2, window_bounds = array<i64: 1, 1, 16>}, {transform_indices = @transform_3, window_bounds = array<i64: 1, 1, 8>}, {pipeline_mode = #tpu.pipeline_mode<synchronous>, transform_indices = @transform_4, window_bounds = array<i64: 1, 32>}, {pipeline_mode = #tpu.pipeline_mode<synchronous>, transform_indices = @transform_5, window_bounds = array<i64: 1, 32>}, {pipeline_mode = #tpu.pipeline_mode<synchronous>, transform_indices = @transform_6, window_bounds = array<i64: 1, 32>}, {transform_indices = @transform_7, window_bounds = array<i64: 1>}, {transform_indices = @transform_8, window_bounds = array<i64: 1, 16, 128>}]} {
    %c0 = arith.constant 0 : index
    %c0_0 = arith.constant 0 : index
    %c0_1 = arith.constant 0 : index
    %0 = vector.load %arg1[%c0, %c0_0, %c0_1] : memref<1x16x32xf32, #tpu.memory_space<vmem>>, vector<1x16x32xf32>
    %c0_2 = arith.constant 0 : index
    %c0_3 = arith.constant 0 : index
    %c0_4 = arith.constant 0 : index
    %1 = vector.load %arg2[%c0_2, %c0_3, %c0_4] : memref<1x8x32xf32, #tpu.memory_space<vmem>>, vector<1x8x32xf32>
    %c0_5 = arith.constant 0 : index
    %c0_6 = arith.constant 0 : index
    %c0_7 = arith.constant 0 : index
    %2 = vector.load %arg4[%c0_5, %c0_6, %c0_7] : memref<1x1x8xf32, #tpu.memory_space<vmem>>, vector<1x1x8xf32>
    %c0_8 = arith.constant 0 : index
    %c0_9 = arith.constant 0 : index
    %c0_10 = arith.constant 0 : index
    %3 = vector.load %arg3[%c0_8, %c0_9, %c0_10] : memref<1x1x16xf32, #tpu.memory_space<vmem>>, vector<1x1x16xf32>
    %4 = tpu.transpose %3, [0, 2, 1] : vector<1x1x16xf32> -> vector<1x16x1xf32>
    %c0_11 = arith.constant 0 : index
    %c0_12 = arith.constant 0 : index
    %5 = vector.load %arg5[%c0_11, %c0_12] : memref<1x32xf32, #tpu.memory_space<vmem>>, vector<1x32xf32>
    %c0_13 = arith.constant 0 : index
    %c0_14 = arith.constant 0 : index
    %6 = vector.load %arg6[%c0_13, %c0_14] : memref<1x32xf32, #tpu.memory_space<vmem>>, vector<1x32xf32>
    %c0_15 = arith.constant 0 : index
    %c0_16 = arith.constant 0 : index
    %7 = vector.load %arg7[%c0_15, %c0_16] : memref<1x32xf32, #tpu.memory_space<vmem>>, vector<1x32xf32>
    %c0_17 = arith.constant 0 : index
    %8 = memref.load %arg8[%c0_17] : memref<1xf32, #tpu.memory_space<smem>>
    %9 = vector.shape_cast %5 : vector<1x32xf32> to vector<1x1x32xf32>
    %10 = vector.broadcast %9 : vector<1x1x32xf32> to vector<1x16x32xf32>
    %11 = arith.mulf %0, %10 : vector<1x16x32xf32>
    %cst = arith.constant dense<0.000000e+00> : vector<1x16xf32>
    %12 = vector.multi_reduction <add>, %11, %cst [2] : vector<1x16x32xf32> to vector<1x16xf32>
    %13 = vector.shape_cast %12 : vector<1x16xf32> to vector<1x16x1xf32>
    %14 = vector.broadcast %8 : f32 to vector<1x16x1xf32>
    %15 = arith.addf %13, %14 : vector<1x16x1xf32>
    %16 = vector.shape_cast %6 : vector<1x32xf32> to vector<1x1x32xf32>
    %17 = vector.broadcast %16 : vector<1x1x32xf32> to vector<1x8x32xf32>
    %18 = arith.mulf %1, %17 : vector<1x8x32xf32>
    %cst_18 = arith.constant dense<0.000000e+00> : vector<1x8xf32>
    %19 = vector.multi_reduction <add>, %18, %cst_18 [2] : vector<1x8x32xf32> to vector<1x8xf32>
    %20 = vector.shape_cast %19 : vector<1x8xf32> to vector<1x1x8xf32>
    %21 = vector.shape_cast %7 : vector<1x32xf32> to vector<1x1x32xf32>
    %22 = vector.broadcast %21 : vector<1x1x32xf32> to vector<1x16x32xf32>
    %23 = arith.mulf %0, %22 : vector<1x16x32xf32>
    "tpu.trace_start"() <{level = 10 : i32, message = "bcd,bqd->bcq"}> : () -> ()
    %cst_19 = arith.constant dense<0.000000e+00> : vector<1x16x8xf32>
    %24 = tpu.matmul %23, %1, %cst_19 {dimension_numbers = #tpu.dot_dimension_numbers<[2], [2], [1], [1], [0, 0, 0, 1, 1, 1], [0], [0]>} : vector<1x16x32xf32>, vector<1x8x32xf32>, vector<1x16x8xf32> -> vector<1x16x8xf32>
    "tpu.trace_stop"() : () -> ()
    %25 = vector.broadcast %15 : vector<1x16x1xf32> to vector<1x16x8xf32>
    %26 = arith.addf %24, %25 : vector<1x16x8xf32>
    %27 = vector.broadcast %20 : vector<1x1x8xf32> to vector<1x16x8xf32>
    %28 = arith.addf %26, %27 : vector<1x16x8xf32>
    %29 = vector.broadcast %2 : vector<1x1x8xf32> to vector<1x16x8xf32>
    %30 = arith.addf %28, %29 : vector<1x16x8xf32>
    %cst_20 = arith.constant dense<0xFF800000> : vector<1x16xf32>
    %31 = vector.multi_reduction <maximumf>, %30, %cst_20 [2] : vector<1x16x8xf32> to vector<1x16xf32>
    %32 = vector.shape_cast %31 : vector<1x16xf32> to vector<1x16x1xf32>
    %33 = vector.broadcast %32 : vector<1x16x1xf32> to vector<1x16x8xf32>
    %34 = arith.subf %30, %33 : vector<1x16x8xf32>
    %35 = math.exp %34 : vector<1x16x8xf32>
    %cst_21 = arith.constant dense<0.000000e+00> : vector<1x16xf32>
    %36 = vector.multi_reduction <add>, %35, %cst_21 [2] : vector<1x16x8xf32> to vector<1x16xf32>
    %37 = vector.shape_cast %36 : vector<1x16xf32> to vector<1x16x1xf32>
    %38 = tpu.reciprocal %37 : vector<1x16x1xf32> -> vector<1x16x1xf32>
    %39 = vector.broadcast %4 : vector<1x16x1xf32> to vector<1x16x8xf32>
    %40 = arith.addf %28, %39 : vector<1x16x8xf32>
    %cst_22 = arith.constant dense<0xFF800000> : vector<1x8xf32>
    %41 = vector.multi_reduction <maximumf>, %40, %cst_22 [1] : vector<1x16x8xf32> to vector<1x8xf32>
    %42 = vector.shape_cast %41 : vector<1x8xf32> to vector<1x1x8xf32>
    %43 = vector.broadcast %42 : vector<1x1x8xf32> to vector<1x16x8xf32>
    %44 = arith.subf %40, %43 : vector<1x16x8xf32>
    %45 = math.exp %44 : vector<1x16x8xf32>
    %cst_23 = arith.constant dense<0.000000e+00> : vector<1x8xf32>
    %46 = vector.multi_reduction <add>, %45, %cst_23 [1] : vector<1x16x8xf32> to vector<1x8xf32>
    %47 = vector.shape_cast %46 : vector<1x8xf32> to vector<1x1x8xf32>
    %48 = tpu.reciprocal %47 : vector<1x1x8xf32> -> vector<1x1x8xf32>
    "tpu.trace_start"() <{level = 10 : i32, message = "bcq,bqd->bcd"}> : () -> ()
    %cst_24 = arith.constant dense<0.000000e+00> : vector<1x16x32xf32>
    %49 = tpu.matmul %35, %1, %cst_24 {dimension_numbers = #tpu.dot_dimension_numbers<[2], [1], [1], [2], [0, 0, 0, 1, 1, 2], [0], [0]>} : vector<1x16x8xf32>, vector<1x8x32xf32>, vector<1x16x32xf32> -> vector<1x16x32xf32>
    "tpu.trace_stop"() : () -> ()
    %50 = vector.broadcast %38 : vector<1x16x1xf32> to vector<1x16x32xf32>
    %51 = arith.mulf %49, %50 : vector<1x16x32xf32>
    "tpu.trace_start"() <{level = 10 : i32, message = "bcq,bcd->bqd"}> : () -> ()
    %cst_25 = arith.constant dense<0.000000e+00> : vector<1x8x32xf32>
    %52 = tpu.matmul %45, %0, %cst_25 {dimension_numbers = #tpu.dot_dimension_numbers<[1], [1], [2], [2], [0, 0, 0, 2, 1, 2], [0], [0]>} : vector<1x16x8xf32>, vector<1x16x32xf32>, vector<1x8x32xf32> -> vector<1x8x32xf32>
    "tpu.trace_stop"() : () -> ()
    %53 = tpu.transpose %48, [0, 2, 1] : vector<1x1x8xf32> -> vector<1x8x1xf32>
    %54 = vector.broadcast %53 : vector<1x8x1xf32> to vector<1x8x32xf32>
    %55 = arith.mulf %52, %54 : vector<1x8x32xf32>
    "tpu.trace_start"() <{level = 10 : i32, message = "bcq,bqd->bcd"}> : () -> ()
    %cst_26 = arith.constant dense<0.000000e+00> : vector<1x16x32xf32>
    %56 = tpu.matmul %35, %55, %cst_26 {dimension_numbers = #tpu.dot_dimension_numbers<[2], [1], [1], [2], [0, 0, 0, 1, 1, 2], [0], [0]>} : vector<1x16x8xf32>, vector<1x8x32xf32>, vector<1x16x32xf32> -> vector<1x16x32xf32>
    "tpu.trace_stop"() : () -> ()
    %57 = vector.broadcast %38 : vector<1x16x1xf32> to vector<1x16x32xf32>
    %58 = arith.mulf %56, %57 : vector<1x16x32xf32>
    %59 = arith.mulf %0, %51 : vector<1x16x32xf32>
    %60 = arith.mulf %0, %58 : vector<1x16x32xf32>
    %61 = tpu.concatenate %0, %51, %59, %60 in 2 : vector<1x16x32xf32>, vector<1x16x32xf32>, vector<1x16x32xf32>, vector<1x16x32xf32> -> vector<1x16x128xf32>
    %c0_27 = arith.constant 0 : index
    %c0_28 = arith.constant 0 : index
    %c0_29 = arith.constant 0 : index
    %62 = vector.load %arg9[%c0_27, %c0_28, %c0_29] : memref<1x16x128xf32, #tpu.memory_space<vmem>>, vector<1x16x128xf32>
    tpu.vector_store %arg9[%c0_27, %c0_28, %c0_29], %61 {strides = array<i32>} : memref<1x16x128xf32, #tpu.memory_space<vmem>>, vector<1x16x128xf32>,
    return
  }
  func.func @transform_0(%arg0: i32) -> (i32, i32, i32) {
    %c0_i32 = arith.constant 0 : i32
    %c0_i32_0 = arith.constant 0 : i32
    %c0_i32_1 = arith.constant 0 : i32
    return %arg0, %c0_i32, %c0_i32_0 : i32, i32, i32
  }
  func.func @transform_1(%arg0: i32) -> (i32, i32, i32) {
    %c0_i32 = arith.constant 0 : i32
    %c0_i32_0 = arith.constant 0 : i32
    %c0_i32_1 = arith.constant 0 : i32
    return %arg0, %c0_i32, %c0_i32_0 : i32, i32, i32
  }
  func.func @transform_2(%arg0: i32) -> (i32, i32, i32) {
    %c0_i32 = arith.constant 0 : i32
    %c0_i32_0 = arith.constant 0 : i32
    %c0_i32_1 = arith.constant 0 : i32
    return %arg0, %c0_i32, %c0_i32_0 : i32, i32, i32
  }
  func.func @transform_3(%arg0: i32) -> (i32, i32, i32) {
    %c0_i32 = arith.constant 0 : i32
    %c0_i32_0 = arith.constant 0 : i32
    %c0_i32_1 = arith.constant 0 : i32
    return %arg0, %c0_i32, %c0_i32_0 : i32, i32, i32
  }
  func.func @transform_4(%arg0: i32) -> (i32, i32) {
    %c0_i32 = arith.constant 0 : i32
    %c0_i32_0 = arith.constant 0 : i32
    %c0_i32_1 = arith.constant 0 : i32
    return %c0_i32, %c0_i32_0 : i32, i32
  }
  func.func @transform_5(%arg0: i32) -> (i32, i32) {
    %c0_i32 = arith.constant 0 : i32
    %c0_i32_0 = arith.constant 0 : i32
    %c0_i32_1 = arith.constant 0 : i32
    return %c0_i32, %c0_i32_0 : i32, i32
  }
  func.func @transform_6(%arg0: i32) -> (i32, i32) {
    %c0_i32 = arith.constant 0 : i32
    %c0_i32_0 = arith.constant 0 : i32
    %c0_i32_1 = arith.constant 0 : i32
    return %c0_i32, %c0_i32_0 : i32, i32
  }
  func.func @transform_7(%arg0: i32) -> i32 {
    %c0_i32 = arith.constant 0 : i32
    %c0_i32_0 = arith.constant 0 : i32
    return %c0_i32 : i32
  }
  func.func @transform_8(%arg0: i32) -> (i32, i32, i32) {
    %c0_i32 = arith.constant 0 : i32
    %c0_i32_0 = arith.constant 0 : i32
    %c0_i32_1 = arith.constant 0 : i32
    return %arg0, %c0_i32, %c0_i32_0 : i32, i32, i32
  }
}

</mosaic_0001>

<bundles_post_ra>
// kernel: tpu_custom_call.1
= control target key start
LH: loop header
LB: loop body
LE: loop exit
PB: predicated region body
PF: predicated region fallthrough
CT: control target
= control target key end

     0   :  { %s1461_s0 = inlined_call_operand.hbm [shape: f32[2,16,32], index: 0, kind: input, shape index: {}]   ;;  %s1462_s1 = inlined_call_operand.hbm [shape: f32[2,8,32], index: 1, kind: input, shape index: {}]   ;;  %s1463_s2 = inlined_call_operand.vmem [shape: f32[2,1,16], index: 2, kind: input, shape index: {}]   ;;  %s1464_s3 = inlined_call_operand.vmem [shape: f32[2,1,8], index: 3, kind: input, shape index: {}]   ;;  %s1465_s4 = inlined_call_operand.vmem [shape: f32[1,32], index: 4, kind: input, shape index: {}]   ;;  %s1466_s5 = inlined_call_operand.vmem [shape: f32[1,32], index: 5, kind: input, shape index: {}]   ;;  %s1467_s6 = inlined_call_operand.vmem [shape: f32[1,32], index: 6, kind: input, shape index: {}]   ;;  %s1468_s7 = inlined_call_operand.<no memory space> [shape: f32[1], index: 7, kind: input, shape index: {}]   ;;  %s1469_s8 = inlined_call_operand.hbm [shape: f32[2,16,128], index: 8, kind: output, shape index: {}]  }
   0x1   :  { %1474 = sst [smem:[#allocation16_spill]] %s1461_s0 }
   0x2   :  { %13 = sst [smem:[#allocation2]] %s1468_s7 }
   0x3   :  { %14 = vsyncpa [#allocation4], 0 }
   0x4   :  { %16 = vsyncpa [#allocation4 + $0x1], 0 }
   0x5   :  { %17 = vsyncpa [#allocation7], 0 }
   0x6   :  { %19 = vsyncpa [#allocation7 + $0x1], 0 }
   0x7   :  { %20 = vsyncpa [#allocation5], 0 }
   0x8   :  { %22 = vsyncpa [#allocation5 + $0x1], 0  ;;  %s1228_s29 = smov 0   ;;  %s1230_s30 = smov 0  }
   0x9   :  { %s1232_s9 = smov 0   ;;  %s1234_s10 = smov 0  }
   0xa LB: > { %1475 = sst [smem:[#allocation12_spill]] %s1166_s9  ;;  %s1249_s7 = sadd.s32 4294967295, %s1170_s10   ;;  %s1170_s10 = sphi %s1234_s10, %s1488_s10   ;;  %s1166_s9 = sphi %s1232_s9, %s1490_s9   ;;  %s1162_s30 = sphi %s1230_s30, %s1492_s30   ;;  %s1158_s29 = sphi %s1228_s29, %s1491_s29  }
   0xb   : > { %s933_s11 = sadd.s32 4294967294, %s1170_s10   ;;  %s1253_s12 = sadd.s32 1, %s1170_s10  }
   0xc   : > { %1476 = sst [smem:[#allocation13_spill]] %s1253_s12  ;;  %s35_s13 = sadd.s32 1, %s1166_s9 }
   0xd   : > { %s32_s14 = ssub.s32 %s1170_s10, %s1253_s12  ;;  %p42_p0 = scmp.ne.s32.totalorder %s1166_s9, %s1162_s30 }
   0xe   : > { %p33_p1 = scmp.eq.s32.totalorder %s32_s14, 0  ;;  %p43_p2 = scmp.eq.s32.totalorder %s1170_s10, 0 }
   0xf   : > { %p48_p3 = scmp.ne.s32.totalorder %s1162_s30, %s1158_s29  ;;  %p49_p4 = scmp.eq.s32.totalorder %s1249_s7, 0 }
  0x10   : > { %s1265_s15 = scalar_select %p33_p1, %s1166_s9, %s35_s13  }
  0x11   : > { %p1267_p5 = por %p43_p2, %p42_p0  ;;  %p1271_p6 = por %p49_p4, %p48_p3 }
  0x12   : > { %1477 = sst [smem:[#allocation14_spill]] %s1265_s15  ;;  %p234_p7 = scmp.eq.s32.totalorder %s1249_s7, 1 }
  0x13   : > { %p240_p8 = scmp.eq.s32.totalorder %s933_s11, 1  ;;  %p977_p10 = scmp.lt.s32.totalorder %s1170_s10, 2 }
  0x14   : > { %p1278_p11 = por %p234_p7, %p42_p0  ;;  %s1287_s20 = sand.u32 1, %s1166_s9  }
  0x15   : > { %p1282_p12 = por %p240_p8, %p48_p3  ;;  %s958_s21 = sshll.u32 %s1170_s10, 4 }
  0x16   : > { %s936_s22 = sshll.u32 %s1287_s20, 4  ;;  %s1483_s0 = sld [smem:[#allocation16_spill]] }
  0x17   : > { %s1481_s19 = scalar_select %p1282_p12, 1, 0 }
  0x18   : > { %s276_s27 = scalar_lea.vmem [#allocation3], %s936_s22  ;;  %p1296_p13 = pnand %p977_p10, %p1267_p5 }
  0x19   : > { %1482 = sst [smem:[#allocation15_spill]] %s1481_s19  ;;  %s284_s28 = sshll.u32 %s276_s27, 4  ;;  %s285_s28 = int_to_ptr.vmem [resolvable:$true] %s284_s28 }
  0x1a   : > { %p941_p0 = scmp.ge.s32.totalorder %s1170_s10, 1  ;;  %p323_p1 = scmp.lt.s32.totalorder %s1170_s10, 3 }
  0x1b   : > { %s273_s13 = scalar_lea.sflag [#allocation4], %s1287_s20  ;;  %p1044_p3 = pneg %p1296_p13 }
  0x1c   : > { %s281_s25 = scalar_lea.hbm %s1483_s0, %s958_s21  ;;  %s1047_s22 = scalar_lea.hbm %s1483_s0, 32 }
  0x1d   : > { %s282_s26 = sshll.u32 %s281_s25, 4  ;;  %s283_s26 = int_to_ptr.hbm [resolvable:$true] %s282_s26 }
  0x1e   : > { %s1040_s14 = sshra.s32 %s283_s26, 4  ;;  %s1041_s14 = int_to_ptr.hbm [resolvable:$true] %s1040_s14 }
  0x1f   : > { %s1042_s15 = scalar_lea.hbm %s1041_s14, 16  ;;  %p1048_p5 = scmp.lt.s32.totalorder %s1041_s14, %s1483_s0 }
  0x20   : > { %p1043_p2 = scmp.ne.s32.totalorder %s1041_s14, %s1042_s15  ;;  %p1049_p8 = scmp.lt.s32.totalorder %s1047_s22, %s1042_s15 }
  0x22   : > { %p1045_p4 = pnand %p1044_p3, %p1043_p2  ;;  %p1050_p10 = por %p1049_p8, %p1048_p5 }
  0x24   : > { %p1046_p7 = pneg %p1045_p4 }
  0x26   : > { %p1051_p9 = pnand %p1050_p10, %p1046_p7 }
  0x28   : > { %1054 = shalt.err (!%p1051_p9)
}
  0x29   : > { %s1172_s25 = smov 128   ;;  %s1173_s27 = smov 8  }
  0x2a   : > { %969 = dma.hbm_to_vmem [thread:$0]  (!%p1296_p13), %s283_s26, 256, %s285_s28, %s273_s13, %s1172_s25, %s1172_s25, %s1173_s27  }
  0x2b   : > { %p1320_p2 = pnand %p941_p0, %p323_p1  ;;  %s939_s15 = sshll.u32 %s1287_s20, 3 }
  0x2c   : > { %s940_s14 = sshll.u32 %s1170_s10, 3  ;;  %s298_s0 = scalar_lea.vmem [#allocation6], %s939_s15 }
  0x2d   : > { %s302_s23 = scalar_lea.hbm %s1462_s1, %s940_s14  ;;  %s306_s9 = sshll.u32 %s298_s0, 4  ;;  %s307_s9 = int_to_ptr.vmem [resolvable:$true] %s306_s9 }
  0x2e   : > { %s304_s24 = sshll.u32 %s302_s23, 4  ;;  %s295_s12 = scalar_lea.sflag [#allocation7], %s1287_s20  ;;  %s305_s24 = int_to_ptr.hbm [resolvable:$true] %s304_s24 }
  0x2f   : > { %s1070_s19 = sshra.s32 %s305_s24, 4  ;;  %s1077_s25 = scalar_lea.hbm %s1462_s1, 16  ;;  %s1071_s19 = int_to_ptr.hbm [resolvable:$true] %s1070_s19 }
  0x30   : > { %s1072_s26 = scalar_lea.hbm %s1071_s19, 8  ;;  %p1078_p4 = scmp.lt.s32.totalorder %s1071_s19, %s1462_s1 }
  0x31   : > { %p1073_p9 = scmp.ne.s32.totalorder %s1071_s19, %s1072_s26  ;;  %p1079_p7 = scmp.lt.s32.totalorder %s1077_s25, %s1072_s26 }
  0x33   : > { %p1075_p0 = pnand %p1073_p9, %p1044_p3  ;;  %p1080_p5 = por %p1079_p7, %p1078_p4 }
  0x35   : > { %p1076_p1 = pneg %p1075_p0 }
  0x37   : > { %p1081_p8 = pnand %p1080_p5, %p1076_p1 }
  0x39   : > { %1084 = shalt.err (!%p1081_p8)
}
  0x3a   : > { %972 = dma.hbm_to_vmem [thread:$0]  (!%p1296_p13), %s305_s24, 128, %s307_s9, %s295_s12  }
  0x3b   : > { %327 = sbr.rel (%p1320_p2) target bundleno = 935 (0x3a7), region = 52  ;;  %s1344_s0 = sand.u32 (!%p1320_p2), 1, %s1162_s30  }
  0x3c   : > { %s942_s20 = sshll.u32 (!%p1320_p2), %s1344_s0, 4  ;;  %s330_s15 = scalar_lea.sflag (!%p1320_p2), [#allocation4], %s1344_s0 }
  0x3d   : > { %s333_s19 = scalar_lea.vmem (!%p1320_p2), [#allocation3], %s942_s20 }
  0x40   : > { %1145 = dma.done.wait (%p1271_p6), %s330_s15, 256  }
  0x41   : > { %1147 = vsyncadd (%p1271_p6), %s330_s15, 4294967040  ;;  %s943_s9 = sshll.u32 %s1344_s0, 3  ;;  %s340_s12 = scalar_lea.sflag [#allocation7], %s1344_s0 }
  0x42   : > { %s343_s11 = scalar_lea.vmem [#allocation6], %s943_s9 }
  0x43   : > { %1149 = dma.done.wait (%p1271_p6), %s340_s12, 128  }
  0x44   : > { %1151 = vsyncadd (%p1271_p6), %s340_s12, 4294967168  ;;  %p388_p13 = scmp.lt.s32.totalorder %s1249_s7, 1  ;;  %vm440_vm0 = vcmask 261120   ;;  %v396_v1 = vld [vmem:[%s343_s11] sm:$0xff]  ;;  %v1374_v4 = vld [vmem:[%s333_s19 + $0x8] sm:$0xff]  ;;  %v1174_v11 = vmov 0   ;;  %v495_v20 = vlaneseq }
  0x45   : > { %v1368_v2 = vld [vmem:[%s333_s19] sm:$0xff]  ;;  %945 = vmatpush.xpose.msk.msra.mxu0 %vm440_vm0, %v396_v1  ;;  %696 = vmatpush.msra.mxu2 %v1374_v4  ;;  %s434_s19 = sld [smem:[#allocation2]]  ;;  %vm518_vm1 = vcmask 64512   ;;  %vm678_vm6 = vcmask 130048   ;;  %s1175_s11 = smov 32   ;;  %vm795_vm15 = vcmask 523264  }
  0x46   : > { %s1362_s16 = scalar_select %p388_p13, %s1249_s7, 1  ;;  %v1022_v3 = vld [vmem:[%s1467_s6] ss:$0 sm:$0xff]  ;;  %636 = vmatpush.msra.mxu1 %v396_v1  ;;  %1020 = vset.pattern.permute.xlu2 %v1174_v11  ;;  %v496_v24 = vand.u32 127, %v495_v20 }
  0x47   : > { %v1023_v5 = vld [vmem:[%s1465_s4] ss:$0 sm:$0xff]  ;;  %v460_v6 = vmul.f32 %v1022_v3, %v1368_v2  ;;  %697 = vmatpush.msra.mxu2 %v1368_v2  ;;  %v461_v9 = vmul.f32 %v1022_v3, %v1374_v4  ;;  %s1177_s21 = smov 96   ;;  %s387_s22 = scalar_lea.vmem [#allocation8], %s942_s20 }
  0x48   : > { %s390_s23 = scalar_lea.vmem %s1463_s2, %s1362_s16  ;;  %s393_s13 = scalar_lea.vmem %s1464_s3, %s1362_s16  ;;  %v439_v7 = vmul.f32 %v1023_v5, %v1374_v4  ;;  %v1024_v10 = vld [vmem:[%s1466_s5] ss:$0 sm:$0xff]  ;;  %v438_v14 = vmul.f32 %v1023_v5, %v1368_v2 }
  0x49   : > { %v398_v0 = vld [vmem:[%s390_s23] sm:$0x1]  ;;  %946 = vmatmul.msk.f32.vlgmr.msra.gmra.mxu0 %vm440_vm0, %v460_v6  ;;  %v453_v12 = vmul.f32 %v1024_v10, %v396_v1  ;;  %s1176_s16 = smov 64   ;;  %s959_s23 = sshll.u32 %s1249_s7, 4 }
  0x4a   : > { %399 = vxpose.xlu0.b32.start.end [1/1] (short) (narrow) %v398_v0, 16  ;;  %v444_v8 = vsel %vm440_vm0, %v439_v7, 0.0  ;;  %v441_v15 = vsel %vm440_vm0, %v438_v14, 0.0  ;;  %s815_s26 = scalar_lea.hbm %s1469_s8, %s959_s23  ;;  %s816_s28 = sshll.u32 %s387_s22, 4  ;;  %s817_s28 = int_to_ptr.vmem [resolvable:$true] %s816_s28 }
  0x4b   : > { %445 = vadd.xlane.f32.xlu1 %v444_v8  ;;  %v454_v13 = vsel %vm440_vm0, %v453_v12, 0.0  ;;  %v447_v21 = vstv %s434_s19  ;;  %s804_s7 = scalar_lea.sflag [#allocation5], %s1344_s0  ;;  %s1120_s15 = scalar_lea.hbm %s1469_s8, 32 }
  0x51   : > { %947 = vmatmul.msk.f32.gmra.mxu0 %vm440_vm0, %v461_v9  ;;  %v1025_v9 = vld [vmem:[%s393_s13] ss:$0 sm:$0xff]  ;;  %s818_s13 = sshll.u32 %s815_s26, 4  ;;  %s819_s13 = int_to_ptr.hbm [resolvable:$true] %s818_s13 }
  0x52   : > { %s1114_s20 = sshra.s32 %s819_s13, 4  ;;  %s1115_s20 = int_to_ptr.hbm [resolvable:$true] %s1114_s20 }
  0x53   : > { %455 = vadd.xlane.f32.xlu1 %v454_v13  ;;  %s1116_s25 = scalar_lea.hbm %s1115_s20, 16  ;;  %p1121_p2 = scmp.lt.s32.totalorder %s1115_s20, %s1469_s8 }
  0x54   : > { %p1117_p6 = scmp.ne.s32.totalorder %s1115_s20, %s1116_s25  ;;  %p1122_p9 = scmp.lt.s32.totalorder %s1120_s15, %s1116_s25 }
  0x56   : > { %p1118_p3 = pnand %p1117_p6, %p1278_p11  ;;  %p1123_p0 = por %p1122_p9, %p1121_p2 }
  0x58   : > { %p1119_p10 = pneg %p1118_p3 }
  0x5a   : > { %p1124_p1 = pnand %p1123_p0, %p1119_p10 }
  0xb1   : > { %1021 = vset.pattern.permute.xlu0 %v1174_v11 }
  0xbe   : > { %v446_v18 = vpop.xlane.xlu1 %445 }
  0xbf   : > { %v449_v26 = vadd.f32 %v447_v21, %v446_v18 }
  0xc3   : > { %442 = vadd.xlane.f32.xlu0 %v441_v15 }
  0xc6   : > { %v488_v19 = vpop.f32.mrf.mxu0  ;;  %v456_v25 = vpop.xlane.xlu1 %455 }
  0xc7   : > { %v497_v28 = vperm.slane %v456_v25, %v496_v24 }
  0xce   : > { %v491_v29 = vpop.f32.mrf.mxu0 }
  0xcf   : > { %v492_v31 = vadd.f32 %v491_v29, %v449_v26 }
  0xd1   : > { %v512_v34 = vadd.f32 %v497_v28, %v492_v31 }
  0xd3   : > { %v517_v10 = vadd.f32 %v1025_v9, %v512_v34 }
  0xd5   : > { %v522_v11 = vsel %vm518_vm1, %v517_v10, -inf }
  0xee   : > { %v415_v16 = vpop.trf.xlu0 }
  0xef   : > { %567 = vperm.xlu2 %1020, %v415_v16  }
  0xf6   : > { %v416_v17 = vpop.trf.xlu0 }
  0xf7   : > { %572 = vperm.xlu2 %1020, %v416_v17  }
 0x136   : > { %v443_v22 = vpop.xlane.xlu0 %442 }
 0x137   : > { %v448_v23 = vadd.f32 %v447_v21, %v443_v22 }
 0x139   : > { %v489_v27 = vadd.f32 %v488_v19, %v448_v23 }
 0x13b   : > { %v511_v32 = vadd.f32 %v497_v28, %v489_v27 }
 0x13d   : > { %v516_v12 = vadd.f32 %v1025_v9, %v511_v32 }
 0x13f   : > { %v519_v13 = vsel %vm518_vm1, %v516_v12, -inf }
 0x149   : > { %v568_v30 = vpop.permute.xlu2 %567 }
 0x14a   : > { %v575_v33 = vadd.f32 %v568_v30, %v511_v32 }
 0x14c   : > { %v577_v37 = vsel %vm518_vm1, %v575_v33, -inf }
 0x151   : > { %v573_v35 = vpop.permute.xlu2 %572 }
 0x152   : > { %v576_v36 = vadd.f32 %v573_v35, %v512_v34 }
 0x154   : > { %v578_v38 = vsel %vm518_vm1, %v576_v36, -inf }
 0x155   : > { %v579_v39 = vmax.f32 %v577_v37, %v578_v38 }
 0x157   : > { %v580_v40 = vrot.slane %v579_v39, 4 }
 0x159   : > { %v581_v41 = vmax.f32 %v579_v39, %v580_v40 }
 0x15b   : > { %v582_v42 = vrot.slane %v581_v41, 2 }
 0x15d   : > { %v583_v43 = vmax.f32 %v581_v41, %v582_v42 }
 0x15f   : > { %v584_v44 = vrot.slane %v583_v43, 1 }
 0x161   : > { %v585_v45 = vmax.f32 %v583_v43, %v584_v44 }
 0x163   : > { %v586_v46 = vsub.f32 %v575_v33, %v585_v45  ;;  %v587_v47 = vsub.f32 %v576_v36, %v585_v45 }
 0x165   : > { %v590_v48 = vmul.f32 1.442695, %v587_v47  ;;  %v588_v49 = vmul.f32 1.442695, %v586_v46 }
 0x167   : > { %1026 = vpow2.f32 %v590_v48 }
 0x168   : > { %1028 = vpow2.f32 %v588_v49 }
 0x16d   : > { %v1027_v50 = vpop.eup %1026 }
 0x16e   : > { %v1029_v51 = vpop.eup %1028  ;;  %v593_v52 = vsel %vm518_vm1, %v1027_v50, 0.0 }
 0x16f   : > { %646 = vxpose.xlu1.b32.start [1/2] (short) (narrow) %v1029_v51, 8  ;;  %v592_v53 = vsel %vm518_vm1, %v1029_v51, 0.0 }
 0x170   : > { %v594_v54 = vadd.f32 %v593_v52, %v592_v53 }
 0x172   : > { %v595_v55 = vrot.slane %v594_v54, 4 }
 0x174   : > { %v596_v56 = vadd.f32 %v595_v55, %v594_v54 }
 0x176   : > { %v597_v57 = vrot.slane %v596_v56, 2 }
 0x177   : > { %647 = vxpose.xlu1.b32.end [2/2] (short) (narrow) %v1027_v50, 8 }
 0x178   : > { %v598_v58 = vadd.f32 %v597_v57, %v596_v56 }
 0x17a   : > { %v599_v59 = vrot.slane %v598_v58, 1 }
 0x17c   : > { %v600_v60 = vadd.f32 %v599_v59, %v598_v58 }
 0x17e   : > { %1030 = vrcp.f32 %v600_v60  ;;  %v612_v0 = vand.u32 2147483648, %v600_v60  ;;  %v610_v3 = vand.u32 2147483647, %v600_v60  ;;  %vm606_vm3 = vweird.f32 %v600_v60 }
 0x180   : > { %v613_v6 = vor.u32 1.1754944e-38, %v612_v0  ;;  %vm611_vm5 = vcmp.eq.f32.partialorder %v610_v3, 8.507059e+37 }
 0x184   : > { %v1031_v61 = vpop.eup %1030 }
 0x185   : > { %v602_v62 = vmul.f32 %v1031_v61, %v600_v60  ;;  %vm607_vm2 = vweird.f32 %v1031_v61 }
 0x186   : > { %vm608_vm4 = vmor %vm606_vm3, %vm607_vm2 }
 0x187   : > { %v603_v63 = vsub.f32 1.0, %v602_v62 }
 0x189   : > { %v604_v1 = vmul.f32 %v1031_v61, %v603_v63 }
 0x18b   : > { %v605_v5 = vadd.f32 %v1031_v61, %v604_v1 }
 0x18d   : > { %v609_v7 = vsel %vm608_vm4, %v1031_v61, %v605_v5 }
 0x18e   : > { %v614_v8 = vsel %vm611_vm5, %v613_v6, %v609_v7 }
 0x18f   : > { %702 = vxpose.xlu2.b32.start.end [1/1] (short) (narrow) %v614_v8, 8 }
 0x1d7   : > { %523 = vmax.xlane.f32.xlu1 %v522_v11 }
 0x200   : > { %520 = vmax.xlane.f32.xlu2 %v519_v13 }
 0x213   : > { %v662_v14 = vpop.trf.xlu1 }
 0x214   : > { %950 = vmatmul.msk.f32.vlgmr.msra.gmra.mxu2 %vm678_vm6, %v662_v14 }
 0x228   : > { %v718_v15 = vpop.trf.xlu2 }
 0x229   : > { %736 = vperm.xlu0 %1021, %v718_v15  }
 0x24a   : > { %v524_v16 = vpop.xlane.xlu1 %523 }
 0x24b   : > { %v526_v17 = vsub.f32 %v517_v10, %v524_v16 }
 0x24d   : > { %v529_v18 = vmul.f32 1.442695, %v526_v17 }
 0x24f   : > { %1032 = vpow2.f32 %v529_v18 }
 0x255   : > { %v1033_v19 = vpop.eup %1032 }
 0x256   : > { %v534_v20 = vsel %vm518_vm1, %v1033_v19, 0.0 }
 0x257   : > { %535 = vadd.xlane.f32.xlu0 %v534_v20 }
 0x273   : > { %v521_v21 = vpop.xlane.xlu2 %520 }
 0x274   : > { %v525_v22 = vsub.f32 %v516_v12, %v521_v21 }
 0x276   : > { %v527_v23 = vmul.f32 1.442695, %v525_v22 }
 0x278   : > { %1034 = vpow2.f32 %v527_v23 }
 0x27e   : > { %v1035_v24 = vpop.eup %1034 }
 0x27f   : > { %948 = vmatmul.msk.f32.vlgmr.msra.gmra.mxu1 %vm518_vm1, %v1035_v24  ;;  %v531_v25 = vsel %vm518_vm1, %v1035_v24, 0.0 }
 0x280   : > { %532 = vadd.xlane.f32.xlu2 %v531_v25 }
 0x287   : > { %949 = vmatmul.msk.f32.gmra.mxu1 %vm518_vm1, %v1033_v19 }
 0x297   : > { %v699_v26 = vpop.f32.mrf.mxu2 }
 0x29b   : > { %v737_v27 = vpop.permute.xlu0 %736 }
 0x29c   : > { %v739_v28 = vmul.f32 %v737_v27, %v699_v26 }
 0x29e   : > { %755 = vmatpush.msra.mxu3 %v739_v28 }
 0x29f   : > { %951 = vmatmul.msk.f32.vlgmr.msra.gmra.mxu3 %vm518_vm1, %v1035_v24 }
 0x2a7   : > { %952 = vmatmul.msk.f32.gmra.mxu3 %vm518_vm1, %v1033_v19  ;;  %vm798_vm1 = vcmask 785408  }
 0x2ca   : > { %v536_v29 = vpop.xlane.xlu0 %535 }
 0x2cb   : > { %1036 = vrcp.f32 %v536_v29  ;;  %vm556_vm8 = vweird.f32 %v536_v29  ;;  %v562_v41 = vand.u32 2147483648, %v536_v29  ;;  %v560_v44 = vand.u32 2147483647, %v536_v29 }
 0x2cd   : > { %v563_v48 = vor.u32 1.1754944e-38, %v562_v41  ;;  %vm561_vm14 = vcmp.eq.f32.partialorder %v560_v44, 8.507059e+37 }
 0x2d1   : > { %v1037_v30 = vpop.eup %1036 }
 0x2d2   : > { %v552_v31 = vmul.f32 %v1037_v30, %v536_v29  ;;  %vm557_vm7 = vweird.f32 %v1037_v30 }
 0x2d3   : > { %vm558_vm10 = vmor %vm556_vm8, %vm557_vm7 }
 0x2d4   : > { %v553_v33 = vsub.f32 1.0, %v552_v31 }
 0x2d6   : > { %v554_v34 = vmul.f32 %v1037_v30, %v553_v33 }
 0x2d8   : > { %v555_v39 = vadd.f32 %v1037_v30, %v554_v34 }
 0x2da   : > { %v559_v46 = vsel %vm558_vm10, %v1037_v30, %v555_v39 }
 0x2db   : > { %v564_v51 = vsel %vm561_vm14, %v563_v48, %v559_v46 }
 0x2f3   : > { %v533_v32 = vpop.xlane.xlu2 %532 }
 0x2f4   : > { %1038 = vrcp.f32 %v533_v32  ;;  %v548_v40 = vand.u32 2147483648, %v533_v32  ;;  %v546_v43 = vand.u32 2147483647, %v533_v32  ;;  %vm542_vm11 = vweird.f32 %v533_v32 }
 0x2f6   : > { %v549_v47 = vor.u32 1.1754944e-38, %v548_v40  ;;  %vm547_vm13 = vcmp.eq.f32.partialorder %v546_v43, 8.507059e+37 }
 0x2fa   : > { %v1039_v35 = vpop.eup %1038 }
 0x2fb   : > { %v538_v36 = vmul.f32 %v1039_v35, %v533_v32  ;;  %vm543_vm9 = vweird.f32 %v1039_v35 }
 0x2fc   : > { %v638_v37 = vpop.f32.mrf.mxu1  ;;  %vm544_vm12 = vmor %vm542_vm11, %vm543_vm9 }
 0x2fd   : > { %v539_v38 = vsub.f32 1.0, %v538_v36 }
 0x2ff   : > { %v540_v42 = vmul.f32 %v1039_v35, %v539_v38 }
 0x301   : > { %v541_v45 = vadd.f32 %v1039_v35, %v540_v42 }
 0x303   : > { %v545_v49 = vsel %vm544_vm12, %v1039_v35, %v541_v45 }
 0x304   : > { %v550_v50 = vsel %vm547_vm13, %v549_v47, %v545_v49  ;;  %v641_v52 = vpop.f32.mrf.mxu1 }
 0x305   : > { %v644_v53 = vmul.f32 %v638_v37, %v550_v50  ;;  %v645_v54 = vmul.f32 %v641_v52, %v564_v51 }
 0x307   : > { %773 = vrot.lane.b32.xlu1 %v645_v54, %s1175_s11  ;;  %771 = vrot.lane.b32.xlu2 %v644_v53, %s1175_s11  ;;  %v765_v55 = vmul.f32 %v644_v53, %v1368_v2  ;;  %v766_v56 = vmul.f32 %v645_v54, %v1374_v4 }
 0x30f   : > { %781 = vrot.lane.b32.xlu1 %v766_v56, %s1176_s16  ;;  %779 = vrot.lane.b32.xlu2 %v765_v55, %s1176_s16 }
 0x322   : > { %v757_v57 = vpop.f32.mrf.mxu3 }
 0x323   : > { %v763_v58 = vmul.f32 %v757_v57, %v550_v50 }
 0x325   : > { %v767_v59 = vmul.f32 %v763_v58, %v1368_v2 }
 0x327   : > { %787 = vrot.lane.b32.xlu2 %v767_v59, %s1177_s21 }
 0x32a   : > { %v760_v60 = vpop.f32.mrf.mxu3 }
 0x32b   : > { %v764_v61 = vmul.f32 %v760_v60, %v564_v51 }
 0x32d   : > { %v768_v62 = vmul.f32 %v764_v61, %v1374_v4 }
 0x32f   : > { %789 = vrot.lane.b32.xlu0 %v768_v62, %s1177_s21 }
 0x361   : > { %v772_v63 = vpop.permute.xlu2 %771 }
 0x362   : > { %v793_v1 = vsel %vm440_vm0, %v1368_v2, %v772_v63 }
 0x369   : > { %v780_v0 = vpop.permute.xlu2 %779 }
 0x36a   : > { %v796_v3 = vsel %vm795_vm15, %v793_v1, %v780_v0 }
 0x379   : > { %v774_v7 = vpop.permute.xlu1 %773 }
 0x37a   : > { %v794_v2 = vsel %vm440_vm0, %v1374_v4, %v774_v7 }
 0x381   : > { %v788_v5 = vpop.permute.xlu2 %787  ;;  %v782_v8 = vpop.permute.xlu1 %781 }
 0x382   : > { %v799_v6 = vsel %vm798_vm1, %v796_v3, %v788_v5  ;;  %v797_v9 = vsel %vm795_vm15, %v794_v2, %v782_v8 }
 0x383   : > { %801 = vst [vmem:[%s387_s22] sm:$0xff] %v799_v6 }
 0x3a1   : > { %v790_v10 = vpop.permute.xlu0 %789 }
 0x3a2   : > { %v800_v11 = vsel %vm798_vm1, %v797_v9, %v790_v10 }
 0x3a3   : > { %802 = vst [vmem:[%s387_s22 + $0x8] sm:$0xff] %v800_v11 }
 0x3a4   : > { %1127 = shalt.err (!%p1124_p1)
}
 0x3a5   : > { %s1178_s0 = smov 128   ;;  %s1179_s12 = smov 8  }
 0x3a6   : > { %964 = dma.vmem_to_hbm [thread:$0]  (%p1278_p11), %s817_s28, 256, %s819_s13, %s804_s7, %s1178_s0, %s1178_s0, %s1179_s12  }
 0x3a7 PF: > { %s833_s16 = sand.u32 1, %s1158_s29   ;;  %p1487_p4 = scmp.ge.s32.totalorder %s1170_s10, 2 }
 0x3a8   : > { %s834_s21 = scalar_lea.sflag [#allocation5], %s833_s16 }
 0x3a9   : > { %p974_p7 = pnand %p1487_p4, %p1282_p12 }
 0x3ab   : > { %p975_p5 = pneg %p974_p7 }
 0x3ad   : > { %1153 = dma.done.wait (%p975_p5), %s834_s21, 256  }
 0x3ae   : > { %1155 = vsyncadd (%p975_p5), %s834_s21, 4294967040  ;;  %s1488_s10 = sld [smem:[#allocation13_spill]]  ;;  %s1491_s29 = smov %s1162_s30 }
 0x3af   : > { %s1489_s22 = sld [smem:[#allocation12_spill]] }
 0x3b0   : > { %s1490_s9 = sld [smem:[#allocation14_spill]] }
 0x3b4   : > { %p25_p8 = scmp.ge.s32.totalorder %s1488_s10, 4  }
 0x3b5   : > { %s1492_s30 = smov %s1489_s22 }
 0x3b6   :  { %27 = sbr.rel (!%p25_p8) target bundleno = 10 (0xa), region = 116 }
 0x3bb   :  { %840 = vsyncpa [#allocation4], 1 }
 0x3bc   :  { %842 = vsyncpa [#allocation4 + $0x1], 1 }
 0x3bd   :  { %843 = vsyncpa [#allocation7], 1 }
 0x3be   :  { %845 = vsyncpa [#allocation7 + $0x1], 1 }
 0x3bf   :  { %846 = vsyncpa [#allocation5], 1 }
 0x3c0   :  { %848 = vsyncpa [#allocation5 + $0x1], 1 }

</bundles_post_ra>
